<compile_context>
chip_gen: v7x
topology: tpu7x:2x2x1
jax: 0.10.0
libtpu: 0.0.40
codegen_flags: <defaults>
</compile_context>

<pallas_src>
import functools

import jax
import jax.numpy as jnp
from jax import lax
from jax.experimental import pallas as pl
from jax.experimental.pallas import tpu as pltpu


# ----------------------------- Pallas kernel --------------------------------

def _supcon_kernel(*refs, inv_temp, has_mask, normalized):
    """Streaming SupCon loss over grid = (row_tiles, queue_tiles).

    Columns = [batch keys k (folded in at j == 0)] ++ [queue row tiles].
    Running scratch over the queue axis:
        l = sum(exp(logit - max)),  s = sum(mask * logit),  c = sum(mask)
        (+ running max m only when `normalized` is False).
    q is pre-scaled by 1/T in the wrapper, so the kernel never multiplies logits.
    When `normalized` (q and all key rows L2-normalized), |logit| <= 1/T, so the
    softmax max is the constant 1/T and the cross-lane max reduce / rescale is
    skipped entirely.
    """
    if has_mask:
        (q_ref, k_ref, rlab_ref, klab_ref, kmask_ref,
         qrows_ref, qlab_ref, qmask_ref, loss_ref, *scratch) = refs
    else:
        (q_ref, k_ref, rlab_ref, klab_ref,
         qrows_ref, qlab_ref, loss_ref, *scratch) = refs
        kmask_ref = qmask_ref = None
    if normalized:
        l_sc, s_sc, c_sc = scratch
        m_sc = None
    else:
        m_sc, l_sc, s_sc, c_sc = scratch

    j = pl.program_id(1)
    nt = pl.num_programs(1)
    contract = (((1,), (1,)), ((), ()))          # (B, d) . (N, d) -> (B, N)

    @pl.when(j == 0)
    def _():
        # Batch-key segment: logits = (q/T) @ k^T, mask = (label==label)[*cr_mask]
        lk = lax.dot_general(q_ref[...], k_ref[...], contract,
                             preferred_element_type=jnp.float32)
        mk = (klab_ref[...] == rlab_ref[...]).astype(jnp.float32)
        if has_mask:
            mk = mk * kmask_ref[...].astype(jnp.float32)
        if normalized:
            l_sc[...] = jnp.sum(jnp.exp(lk - inv_temp), axis=1, keepdims=True)
        else:
            m0 = jnp.max(lk, axis=1, keepdims=True)
            m_sc[...] = m0
            l_sc[...] = jnp.sum(jnp.exp(lk - m0), axis=1, keepdims=True)
        s_sc[...] = jnp.sum(mk * lk, axis=1, keepdims=True)
        c_sc[...] = jnp.sum(mk, axis=1, keepdims=True)

    # Queue tile j: logits = (q/T) @ queue_tile^T   (bf16 MXU, f32 accumulate)
    lq = lax.dot_general(q_ref[...], qrows_ref[...], contract,
                         preferred_element_type=jnp.float32)
    mq = (qlab_ref[...] == rlab_ref[...]).astype(jnp.float32)
    if has_mask:
        mq = mq * qmask_ref[...].astype(jnp.float32)

    if normalized:
        l_sc[...] = l_sc[...] + jnp.sum(jnp.exp(lq - inv_temp), axis=1, keepdims=True)
    else:
        m_prev = m_sc[...]
        m_new = jnp.maximum(m_prev, jnp.max(lq, axis=1, keepdims=True))
        alpha = jnp.exp(m_prev - m_new)
        l_sc[...] = alpha * l_sc[...] + jnp.sum(jnp.exp(lq - m_new),
                                                axis=1, keepdims=True)
        m_sc[...] = m_new
    s_sc[...] = s_sc[...] + jnp.sum(mq * lq, axis=1, keepdims=True)
    c_sc[...] = c_sc[...] + jnp.sum(mq, axis=1, keepdims=True)

    @pl.when(j == nt - 1)
    def _():
        # sum(mask * log_prob) = sum(mask*logits) - lse * sum(mask)
        if normalized:
            lse = inv_temp + jnp.log(l_sc[...])
        else:
            lse = m_sc[...] + jnp.log(l_sc[...])
        cnt = c_sc[...]
        denom = jnp.where(cnt > 0.0, cnt, 1.0)
        # Exact divide: runs once per row tile, approx reciprocal not worth the error.
        loss_ref[...] = -(s_sc[...] - lse * cnt) / denom


def _vmem_limit_bytes():
    try:
        cap = int(pltpu.get_tpu_info().vmem_capacity_bytes)
    except Exception:  # conservative fallback if the query is unavailable
        cap = 64 * 1024 * 1024
    # ~half of physical: 64 MiB on v5e/v6e (128 MiB VMEM), 32 MiB on v7x (64 MiB).
    return int(min(max(cap // 2, 32 * 1024 * 1024), 96 * 1024 * 1024))


def _supcon_loss(q_scaled_bf, k_bf, row_label, kcol_label, kcol_mask,
                 queues_bf, qcol_label, qcol_mask, *, sup, inv_temp,
                 assume_normalized):
    """Per-row SupCon loss (B, 1) via a tiled/pipelined pallas_call."""
    B, dim = q_scaled_bf.shape
    two_k = queues_bf.shape[0]
    K = two_k // 2
    nq_used = qcol_label.shape[1]            # K (sup) or 2K (unsup) queue columns
    has_mask = kcol_mask is not None

    # ------------------------- tile selection -------------------------------
    # Prefer nb == 1 (queue streamed from HBM once); split rows only for large B.
    if B <= 256:
        tile_b = B
    else:
        tile_b = B
        for cand in (256, 128, 64, 32, 16, 8):
            if B % cand == 0:
                tile_b = cand
                break
    nb = B // tile_b

    vmem_limit = _vmem_limit_bytes()
    budget_bytes = max(4 * 1024 * 1024, vmem_limit // 8)      # per queue-tile buffer
    max_rows = max(128, budget_bytes // (dim * 2))            # bf16 rows / buffer
    tile_n = nq_used
    for cand in (8192, 4096, 2048, 1024, 512, 256, 128):
        if cand <= max_rows and nq_used >= cand and nq_used % cand == 0:
            tile_n = cand
            break
    # TODO(synk): pad nq_used (zero rows + mask-0 columns) to a multiple of 128 so
    # awkward K never falls back to a single oversized (nq_used, dim) block.
    nt = nq_used // tile_n
    # sup path reads only the squeue half (rows [K, 2K)) -> block offset.
    row_block_off = (K // tile_n) if sup else 0

    in_specs = [
        pl.BlockSpec((tile_b, dim), lambda i, j: (i, 0)),                  # q/T (bf16)
        pl.BlockSpec((B, dim),      lambda i, j: (0, 0)),                  # k   (bf16)
        pl.BlockSpec((tile_b, 1),   lambda i, j: (i, 0)),                  # row labels
        pl.BlockSpec((1, B),        lambda i, j: (0, 0)),                  # k-seg labels
    ]
    inputs = [q_scaled_bf, k_bf, row_label, kcol_label]
    if has_mask:
        in_specs.append(pl.BlockSpec((1, B), lambda i, j: (0, 0)))         # k-seg mask
        inputs.append(kcol_mask)
    in_specs += [
        pl.BlockSpec((tile_n, dim), lambda i, j: (row_block_off + j, 0)),  # queue rows
        pl.BlockSpec((1, tile_n),   lambda i, j: (0, j)),                  # queue labels
    ]
    inputs += [queues_bf, qcol_label]
    if has_mask:
        in_specs.append(pl.BlockSpec((1, tile_n), lambda i, j: (0, j)))    # queue mask
        inputs.append(qcol_mask)

    n_scratch = 3 if assume_normalized else 4                  # (m,) l, s, c
    kern = functools.partial(_supcon_kernel, inv_temp=float(inv_temp),
                             has_mask=has_mask, normalized=assume_normalized)
    grid_spec = pltpu.PrefetchScalarGridSpec(
        num_scalar_prefetch=0,
        grid=(nb, nt),
        in_specs=in_specs,
        out_specs=pl.BlockSpec((tile_b, 1), lambda i, j: (i, 0)),
        scratch_shapes=[pltpu.VMEM((tile_b, 1), jnp.float32)] * n_scratch,
    )
    return pl.pallas_call(
        kern,
        out_shape=jax.ShapeDtypeStruct((B, 1), jnp.float32),
        grid_spec=grid_spec,
        compiler_params=pltpu.CompilerParams(
            dimension_semantics=("parallel", "arbitrary"),
            vmem_limit_bytes=vmem_limit),
    )(*inputs)


# --------------------------- FeatureCache state ------------------------------

def init_feature_cache(key, dim, K):
    """State mirroring the PyTorch buffers, but row-major / combined for TPU."""
    if K % 8 != 0:
        raise ValueError("K must be a multiple of 8 for TPU sublane tiling")
    ku, ks = jax.random.split(key)
    uq = jax.random.normal(ku, (K, dim), jnp.float32)
    sq = jax.random.normal(ks, (K, dim), jnp.float32)
    uq = uq / jnp.linalg.norm(uq, axis=1, keepdims=True)
    sq = sq / jnp.linalg.norm(sq, axis=1, keepdims=True)
    return {
        # rows [0, K) = uqueue, rows [K, 2K) = squeue  (row-major, bf16 for DMA)
        "queues": jnp.concatenate([uq, sq], axis=0).astype(jnp.bfloat16),
        # [0, K) = ulabel_queue, [K, 2K) = slabel_queue  (init -1), int32 compare
        "labels": -jnp.ones((2 * K,), jnp.int32),
        # [0, K) = mask_queue (init 0), [K, 2K) = smask (init 1)
        "masks": jnp.concatenate([jnp.zeros((K,), jnp.int32),
                                  jnp.ones((K,), jnp.int32)]),
        "uqueue_ptr": jnp.zeros((), jnp.int32),
        "squeue_ptr": jnp.zeros((), jnp.int32),
    }


def _enqueue(queues, labels, masks, ptr, base, k_rows, label_i, mask_rows):
    """Circular enqueue of B rows at `base + ptr` within one K-row segment."""
    K = queues.shape[0] // 2
    B = k_rows.shape[0]
    k_rows = k_rows.astype(queues.dtype)
    label_i = label_i.astype(labels.dtype)
    if mask_rows is not None:
        mask_rows = mask_rows.astype(masks.dtype)
    if K % B == 0:
        # Pointer always lands on a multiple of B -> never wraps mid-batch:
        # one contiguous, lane-dense row write.
        start = base + ptr
        queues = lax.dynamic_update_slice(queues, k_rows, (start, 0))
        labels = lax.dynamic_update_slice(labels, label_i, (start,))
        if mask_rows is not None:
            masks = lax.dynamic_update_slice(masks, mask_rows, (start,))
    else:
        # Wrap-around fallback (mirrors the PyTorch split-on-wrap path) using only
        # contiguous lane-dense writes via a (K+B)-row staging view -- no scatter.
        # Assumes B <= K (as the PyTorch reference implicitly does).
        def wrap_write(buf, upd):
            seg = buf[base:base + K]                              # static slice
            ext = jnp.concatenate([seg, seg[:B]], axis=0)         # (K+B, ...)
            idx = (ptr, 0) if upd.ndim == 2 else (ptr,)
            ext = lax.dynamic_update_slice(ext, upd, idx)
            seg_new = lax.dynamic_update_slice(ext[:K], ext[K:], (0,) * upd.ndim)
            return buf.at[base:base + K].set(seg_new)
        queues = wrap_write(queues, k_rows)
        labels = wrap_write(labels, label_i)
        if mask_rows is not None:
            masks = wrap_write(masks, mask_rows)
    new_ptr = (ptr + B) % K
    return queues, labels, masks, new_ptr


def feature_cache_forward(state, q, k, label, sup, cr_mask=None, step=0,
                          T=0.07, F=1, assume_normalized=True):
    """Returns (loss, new_state). Mirrors FeatureCache.forward semantics.

    `assume_normalized=True` requires q and all key/queue rows to be L2-normalized
    (true for this module); it lets the kernel use the constant 1/T softmax max.
    """
    queues, labels, masks = state["queues"], state["labels"], state["masks"]
    K = queues.shape[0] // 2
    B, _ = q.shape
    label_i = label.astype(jnp.int32)
    inv_temp = 1.0 / T

    if sup and cr_mask is not None:
        # In the PyTorch reference this combination is shape-inconsistent
        # (mask_enqueue has B+2K entries vs B+K logit columns) and would error.
        raise ValueError("cr_mask is only supported on the unsupervised (sup=False) path")

    if sup:
        qcol_label = labels[K:].reshape(1, K)        # squeue labels only
        nq_used = K
    else:
        qcol_label = labels.reshape(1, 2 * K)        # [ulabel_queue, slabel_queue]
        nq_used = 2 * K

    if cr_mask is not None:
        kcol_mask = cr_mask.astype(jnp.int32).reshape(1, B)
        qcol_mask = masks.reshape(1, 2 * K)          # [mask_queue, smask]
    else:
        kcol_mask = None                             # mask path specialized away
        qcol_mask = None

    # Fold 1/T into q once (f32), then cast to bf16 for the MXU.
    q_scaled_bf = (q.astype(jnp.float32) * inv_temp).astype(jnp.bfloat16)
    k_bf = k.astype(jnp.bfloat16)

    loss_rows = _supcon_loss(q_scaled_bf, k_bf,
                             label_i.reshape(B, 1), label_i.reshape(1, B),
                             kcol_mask, queues, qcol_label, qcol_mask,
                             sup=sup, inv_temp=inv_temp,
                             assume_normalized=assume_normalized)
    loss = jnp.mean(loss_rows)

    new_state = dict(state)
    if K > 0:
        if not sup:
            cm = cr_mask if cr_mask is not None else jnp.ones((B,), jnp.int32)
            queues, labels, masks, uptr = _enqueue(
                queues, labels, masks, state["uqueue_ptr"], 0, k_bf, label_i, cm)
            new_state["uqueue_ptr"] = uptr
        if sup or (step % F == 0):
            queues, labels, masks, sptr = _enqueue(
                queues, labels, masks, state["squeue_ptr"], K, k_bf, label_i, None)
            new_state["squeue_ptr"] = sptr
        new_state["queues"] = queues
        new_state["labels"] = labels
        new_state["masks"] = masks
    return loss, new_state


# --------------------------- pure-JAX reference -------------------------------

def _reference_loss(state, q, k, label, sup, cr_mask, T):
    """Direct transliteration of the PyTorch forward (f32), for validation."""
    queues = state["queues"].astype(jnp.float32)
    K = queues.shape[0] // 2
    if sup:
        queue_, label_ = queues[K:], state["labels"][K:]
    else:
        queue_, label_ = queues, state["labels"]
    kf = k.astype(jnp.bfloat16).astype(jnp.float32)
    qf = q.astype(jnp.bfloat16).astype(jnp.float32)
    feats = jnp.concatenate([kf, queue_], axis=0)                 # (N, dim)
    label_enq = jnp.concatenate([label.astype(jnp.int32), label_])
    logits = jnp.dot(qf, feats.T, precision=lax.Precision.HIGHEST) / T
    mask = (label_enq[None, :] == label[:, None]).astype(jnp.float32)
    if cr_mask is not None:
        mask_enq = jnp.concatenate([cr_mask.astype(jnp.float32),
                                    state["masks"].astype(jnp.float32)])
        mask = mask * mask_enq[None, :]
    lmax = jnp.max(logits, axis=1, keepdims=True)
    lsh = logits - lmax
    log_prob = lsh - jnp.log(jnp.sum(jnp.exp(lsh), axis=1, keepdims=True))
    msum = jnp.sum(mask, axis=1)
    msum = jnp.where(msum > 0, msum, 1.0)
    mean_lp = jnp.sum(mask * log_prob, axis=1) / msum
    return jnp.mean(-mean_lp)


# ---------------------------------- main -------------------------------------

if __name__ == "__main__":
    dim, K, B = 128, 64, 8            # small, lane-aligned shapes
    key = jax.random.PRNGKey(0)
    kq, kk, kl, ks = jax.random.split(key, 4)

    state0 = init_feature_cache(ks, dim, K)

    q = jax.random.normal(kq, (B, dim), jnp.float32)
    q = q / jnp.linalg.norm(q, axis=1, keepdims=True)
    k = jax.random.normal(kk, (B, dim), jnp.float32)
    k = k / jnp.linalg.norm(k, axis=1, keepdims=True)
    label = jax.random.randint(kl, (B,), 0, 3, jnp.int32)
    cr_mask = jnp.ones((B,), jnp.int32)

    # unsupervised path (both queues + cr_mask/mask_queue/smask), then enqueue
    loss_u, state1 = feature_cache_forward(state0, q, k, label, sup=False,
                                           cr_mask=cr_mask, step=0)
    # supervised path (squeue half only, no masks -> specialized kernel variant)
    loss_s, state2 = feature_cache_forward(state1, q, k, label, sup=True,
                                           cr_mask=None, step=1)
    jax.block_until_ready((loss_u, loss_s, state2))

    ref_u = _reference_loss(state0, q, k, label, sup=False, cr_mask=cr_mask, T=0.07)
    ref_s = _reference_loss(state1, q, k, label, sup=True, cr_mask=None, T=0.07)
    assert abs(float(loss_u) - float(ref_u)) < 5e-2 * max(1.0, abs(float(ref_u))), \
        (float(loss_u), float(ref_u))
    assert abs(float(loss_s) - float(ref_s)) < 5e-2 * max(1.0, abs(float(ref_s))), \
        (float(loss_s), float(ref_s))
    print("KERNEL_OK")
</pallas_src>

<mosaic_0001>
module attributes {stable_mosaic.version = 11 : i64} {
  func.func @_supcon_kernel(%arg0: i32, %arg1: i32, %arg2: memref<8x128xbf16, #tpu.memory_space<vmem>>, %arg3: memref<8x128xbf16, #tpu.memory_space<vmem>>, %arg4: memref<8x1xi32, #tpu.memory_space<vmem>>, %arg5: memref<1x8xi32, #tpu.memory_space<vmem>>, %arg6: memref<1x8xi32, #tpu.memory_space<vmem>>, %arg7: memref<128x128xbf16, #tpu.memory_space<vmem>>, %arg8: memref<1x128xi32, #tpu.memory_space<vmem>>, %arg9: memref<1x128xi32, #tpu.memory_space<vmem>>, %arg10: memref<8x1xf32, #tpu.memory_space<vmem>>, %arg11: memref<8x1xf32, #tpu.memory_space<vmem>>, %arg12: memref<8x1xf32, #tpu.memory_space<vmem>>, %arg13: memref<8x1xf32, #tpu.memory_space<vmem>>) attributes {dimension_semantics = [#tpu.dimension_semantics<parallel>, #tpu.dimension_semantics<arbitrary>], iteration_bounds = array<i64: 1, 1>, scalar_prefetch = 0 : i64, scratch_operands = 3 : i64, tpu.core_type = #tpu.core_type<tc>, window_params = [{transform_indices = @transform_0, window_bounds = array<i64: 8, 128>}, {pipeline_mode = #tpu.pipeline_mode<synchronous>, transform_indices = @transform_1, window_bounds = array<i64: 8, 128>}, {transform_indices = @transform_2, window_bounds = array<i64: 8, 1>}, {pipeline_mode = #tpu.pipeline_mode<synchronous>, transform_indices = @transform_3, window_bounds = array<i64: 1, 8>}, {pipeline_mode = #tpu.pipeline_mode<synchronous>, transform_indices = @transform_4, window_bounds = array<i64: 1, 8>}, {transform_indices = @transform_5, window_bounds = array<i64: 128, 128>}, {transform_indices = @transform_6, window_bounds = array<i64: 1, 128>}, {transform_indices = @transform_7, window_bounds = array<i64: 1, 128>}, {transform_indices = @transform_8, window_bounds = array<i64: 8, 1>}]} {
    %c0_i32 = arith.constant 0 : i32
    %0 = arith.cmpi eq, %arg1, %c0_i32 : i32
    %1 = arith.extui %0 : i1 to i32
    %c0_i32_0 = arith.constant 0 : i32
    %2 = arith.cmpi ne, %1, %c0_i32_0 : i32
    scf.if %2 {
      %c0_28 = arith.constant 0 : index
      %c0_29 = arith.constant 0 : index
      %39 = vector.load %arg2[%c0_28, %c0_29] : memref<8x128xbf16, #tpu.memory_space<vmem>>, vector<8x128xbf16>
      %c0_30 = arith.constant 0 : index
      %c0_31 = arith.constant 0 : index
      %40 = vector.load %arg3[%c0_30, %c0_31] : memref<8x128xbf16, #tpu.memory_space<vmem>>, vector<8x128xbf16>
      %cst_32 = arith.constant dense<0.000000e+00> : vector<8x8xf32>
      %41 = tpu.matmul %39, %40, %cst_32 {dimension_numbers = #tpu.dot_dimension_numbers<[1], [1], [0], [0], [0, 0, 1, 0], [], []>} : vector<8x128xbf16>, vector<8x128xbf16>, vector<8x8xf32> -> vector<8x8xf32>
      %c0_33 = arith.constant 0 : index
      %c0_34 = arith.constant 0 : index
      %42 = vector.load %arg5[%c0_33, %c0_34] : memref<1x8xi32, #tpu.memory_space<vmem>>, vector<1x8xi32>
      %c0_35 = arith.constant 0 : index
      %c0_36 = arith.constant 0 : index
      %43 = vector.load %arg4[%c0_35, %c0_36] : memref<8x1xi32, #tpu.memory_space<vmem>>, vector<8x1xi32>
      %44 = vector.broadcast %42 : vector<1x8xi32> to vector<8x8xi32>
      %45 = vector.broadcast %43 : vector<8x1xi32> to vector<8x8xi32>
      %46 = arith.cmpi eq, %44, %45 : vector<8x8xi32>
      %47 = arith.extui %46 : vector<8x8xi1> to vector<8x8xi32>
      %48 = arith.sitofp %47 : vector<8x8xi32> to vector<8x8xf32>
      %c0_37 = arith.constant 0 : index
      %c0_38 = arith.constant 0 : index
      %49 = vector.load %arg6[%c0_37, %c0_38] : memref<1x8xi32, #tpu.memory_space<vmem>>, vector<1x8xi32>
      %50 = arith.sitofp %49 : vector<1x8xi32> to vector<1x8xf32>
      %51 = vector.broadcast %50 : vector<1x8xf32> to vector<8x8xf32>
      %52 = arith.mulf %48, %51 : vector<8x8xf32>
      %cst_39 = arith.constant 14.2857141 : f32
      %53 = vector.broadcast %cst_39 : f32 to vector<8x8xf32>
      %54 = arith.subf %41, %53 : vector<8x8xf32>
      %55 = math.exp %54 : vector<8x8xf32>
      %cst_40 = arith.constant dense<0.000000e+00> : vector<8xf32>
      %56 = vector.multi_reduction <add>, %55, %cst_40 [1] : vector<8x8xf32> to vector<8xf32>
      %57 = vector.shape_cast %56 : vector<8xf32> to vector<8x1xf32>
      %c0_41 = arith.constant 0 : index
      %c0_42 = arith.constant 0 : index
      %58 = vector.load %arg11[%c0_41, %c0_42] : memref<8x1xf32, #tpu.memory_space<vmem>>, vector<8x1xf32>
      tpu.vector_store %arg11[%c0_41, %c0_42], %57 {strides = array<i32>} : memref<8x1xf32, #tpu.memory_space<vmem>>, vector<8x1xf32>,
      %59 = arith.mulf %52, %41 : vector<8x8xf32>
      %cst_43 = arith.constant dense<0.000000e+00> : vector<8xf32>
      %60 = vector.multi_reduction <add>, %59, %cst_43 [1] : vector<8x8xf32> to vector<8xf32>
      %61 = vector.shape_cast %60 : vector<8xf32> to vector<8x1xf32>
      %c0_44 = arith.constant 0 : index
      %c0_45 = arith.constant 0 : index
      %62 = vector.load %arg12[%c0_44, %c0_45] : memref<8x1xf32, #tpu.memory_space<vmem>>, vector<8x1xf32>
      tpu.vector_store %arg12[%c0_44, %c0_45], %61 {strides = array<i32>} : memref<8x1xf32, #tpu.memory_space<vmem>>, vector<8x1xf32>,
      %cst_46 = arith.constant dense<0.000000e+00> : vector<8xf32>
      %63 = vector.multi_reduction <add>, %52, %cst_46 [1] : vector<8x8xf32> to vector<8xf32>
      %64 = vector.shape_cast %63 : vector<8xf32> to vector<8x1xf32>
      %c0_47 = arith.constant 0 : index
      %c0_48 = arith.constant 0 : index
      %65 = vector.load %arg13[%c0_47, %c0_48] : memref<8x1xf32, #tpu.memory_space<vmem>>, vector<8x1xf32>
      tpu.vector_store %arg13[%c0_47, %c0_48], %64 {strides = array<i32>} : memref<8x1xf32, #tpu.memory_space<vmem>>, vector<8x1xf32>,
    } else {
    }
    %c0 = arith.constant 0 : index
    %c0_1 = arith.constant 0 : index
    %3 = vector.load %arg2[%c0, %c0_1] : memref<8x128xbf16, #tpu.memory_space<vmem>>, vector<8x128xbf16>
    %c0_2 = arith.constant 0 : index
    %c0_3 = arith.constant 0 : index
    %4 = vector.load %arg7[%c0_2, %c0_3] : memref<128x128xbf16, #tpu.memory_space<vmem>>, vector<128x128xbf16>
    %cst = arith.constant dense<0.000000e+00> : vector<8x128xf32>
    %5 = tpu.matmul %3, %4, %cst {dimension_numbers = #tpu.dot_dimension_numbers<[1], [1], [0], [0], [0, 0, 1, 0], [], []>} : vector<8x128xbf16>, vector<128x128xbf16>, vector<8x128xf32> -> vector<8x128xf32>
    %c0_4 = arith.constant 0 : index
    %c0_5 = arith.constant 0 : index
    %6 = vector.load %arg8[%c0_4, %c0_5] : memref<1x128xi32, #tpu.memory_space<vmem>>, vector<1x128xi32>
    %c0_6 = arith.constant 0 : index
    %c0_7 = arith.constant 0 : index
    %7 = vector.load %arg4[%c0_6, %c0_7] : memref<8x1xi32, #tpu.memory_space<vmem>>, vector<8x1xi32>
    %8 = vector.broadcast %6 : vector<1x128xi32> to vector<8x128xi32>
    %9 = vector.broadcast %7 : vector<8x1xi32> to vector<8x128xi32>
    %10 = arith.cmpi eq, %8, %9 : vector<8x128xi32>
    %11 = arith.extui %10 : vector<8x128xi1> to vector<8x128xi32>
    %12 = arith.sitofp %11 : vector<8x128xi32> to vector<8x128xf32>
    %c0_8 = arith.constant 0 : index
    %c0_9 = arith.constant 0 : index
    %13 = vector.load %arg9[%c0_8, %c0_9] : memref<1x128xi32, #tpu.memory_space<vmem>>, vector<1x128xi32>
    %14 = arith.sitofp %13 : vector<1x128xi32> to vector<1x128xf32>
    %15 = vector.broadcast %14 : vector<1x128xf32> to vector<8x128xf32>
    %16 = arith.mulf %12, %15 : vector<8x128xf32>
    %c0_10 = arith.constant 0 : index
    %c0_11 = arith.constant 0 : index
    %17 = vector.load %arg11[%c0_10, %c0_11] : memref<8x1xf32, #tpu.memory_space<vmem>>, vector<8x1xf32>
    %cst_12 = arith.constant 14.2857141 : f32
    %18 = vector.broadcast %cst_12 : f32 to vector<8x128xf32>
    %19 = arith.subf %5, %18 : vector<8x128xf32>
    %20 = math.exp %19 : vector<8x128xf32>
    %cst_13 = arith.constant dense<0.000000e+00> : vector<8xf32>
    %21 = vector.multi_reduction <add>, %20, %cst_13 [1] : vector<8x128xf32> to vector<8xf32>
    %22 = vector.shape_cast %21 : vector<8xf32> to vector<8x1xf32>
    %23 = arith.addf %17, %22 : vector<8x1xf32>
    %c0_14 = arith.constant 0 : index
    %c0_15 = arith.constant 0 : index
    %24 = vector.load %arg11[%c0_14, %c0_15] : memref<8x1xf32, #tpu.memory_space<vmem>>, vector<8x1xf32>
    tpu.vector_store %arg11[%c0_14, %c0_15], %23 {strides = array<i32>} : memref<8x1xf32, #tpu.memory_space<vmem>>, vector<8x1xf32>,
    %c0_16 = arith.constant 0 : index
    %c0_17 = arith.constant 0 : index
    %25 = vector.load %arg12[%c0_16, %c0_17] : memref<8x1xf32, #tpu.memory_space<vmem>>, vector<8x1xf32>
    %26 = arith.mulf %16, %5 : vector<8x128xf32>
    %cst_18 = arith.constant dense<0.000000e+00> : vector<8xf32>
    %27 = vector.multi_reduction <add>, %26, %cst_18 [1] : vector<8x128xf32> to vector<8xf32>
    %28 = vector.shape_cast %27 : vector<8xf32> to vector<8x1xf32>
    %29 = arith.addf %25, %28 : vector<8x1xf32>
    %c0_19 = arith.constant 0 : index
    %c0_20 = arith.constant 0 : index
    %30 = vector.load %arg12[%c0_19, %c0_20] : memref<8x1xf32, #tpu.memory_space<vmem>>, vector<8x1xf32>
    tpu.vector_store %arg12[%c0_19, %c0_20], %29 {strides = array<i32>} : memref<8x1xf32, #tpu.memory_space<vmem>>, vector<8x1xf32>,
    %c0_21 = arith.constant 0 : index
    %c0_22 = arith.constant 0 : index
    %31 = vector.load %arg13[%c0_21, %c0_22] : memref<8x1xf32, #tpu.memory_space<vmem>>, vector<8x1xf32>
    %cst_23 = arith.constant dense<0.000000e+00> : vector<8xf32>
    %32 = vector.multi_reduction <add>, %16, %cst_23 [1] : vector<8x128xf32> to vector<8xf32>
    %33 = vector.shape_cast %32 : vector<8xf32> to vector<8x1xf32>
    %34 = arith.addf %31, %33 : vector<8x1xf32>
    %c0_24 = arith.constant 0 : index
    %c0_25 = arith.constant 0 : index
    %35 = vector.load %arg13[%c0_24, %c0_25] : memref<8x1xf32, #tpu.memory_space<vmem>>, vector<8x1xf32>
    tpu.vector_store %arg13[%c0_24, %c0_25], %34 {strides = array<i32>} : memref<8x1xf32, #tpu.memory_space<vmem>>, vector<8x1xf32>,
    %c0_i32_26 = arith.constant 0 : i32
    %36 = arith.cmpi eq, %arg1, %c0_i32_26 : i32
    %37 = arith.extui %36 : i1 to i32
    %c0_i32_27 = arith.constant 0 : i32
    %38 = arith.cmpi ne, %37, %c0_i32_27 : i32
    scf.if %38 {
      %c0_28 = arith.constant 0 : index
      %c0_29 = arith.constant 0 : index
      %39 = vector.load %arg11[%c0_28, %c0_29] : memref<8x1xf32, #tpu.memory_space<vmem>>, vector<8x1xf32>
      %40 = math.log %39 : vector<8x1xf32>
      %cst_30 = arith.constant 14.2857141 : f32
      %41 = vector.broadcast %cst_30 : f32 to vector<8x1xf32>
      %42 = arith.addf %41, %40 : vector<8x1xf32>
      %c0_31 = arith.constant 0 : index
      %c0_32 = arith.constant 0 : index
      %43 = vector.load %arg13[%c0_31, %c0_32] : memref<8x1xf32, #tpu.memory_space<vmem>>, vector<8x1xf32>
      %cst_33 = arith.constant 0.000000e+00 : f32
      %44 = vector.broadcast %cst_33 : f32 to vector<8x1xf32>
      %45 = arith.cmpf ogt, %43, %44 : vector<8x1xf32>
      %cst_34 = arith.constant 1.000000e+00 : f32
      %46 = vector.broadcast %cst_34 : f32 to vector<8x1xf32>
      %47 = arith.select %45, %43, %46 : vector<8x1xi1>, vector<8x1xf32>
      %c0_35 = arith.constant 0 : index
      %c0_36 = arith.constant 0 : index
      %48 = vector.load %arg12[%c0_35, %c0_36] : memref<8x1xf32, #tpu.memory_space<vmem>>, vector<8x1xf32>
      %49 = arith.mulf %42, %43 : vector<8x1xf32>
      %50 = arith.subf %48, %49 : vector<8x1xf32>
      %cst_37 = arith.constant 0.000000e+00 : f32
      %51 = vector.broadcast %cst_37 : f32 to vector<8x1xf32>
      %52 = arith.subf %51, %50 : vector<8x1xf32>
      %53 = arith.divf %52, %47 : vector<8x1xf32>
      %c0_38 = arith.constant 0 : index
      %c0_39 = arith.constant 0 : index
      %54 = vector.load %arg10[%c0_38, %c0_39] : memref<8x1xf32, #tpu.memory_space<vmem>>, vector<8x1xf32>
      tpu.vector_store %arg10[%c0_38, %c0_39], %53 {strides = array<i32>} : memref<8x1xf32, #tpu.memory_space<vmem>>, vector<8x1xf32>,
    } else {
    }
    return
  }
  func.func @transform_0(%arg0: i32, %arg1: i32) -> (i32, i32) {
    %c0_i32 = arith.constant 0 : i32
    %c0_i32_0 = arith.constant 0 : i32
    return %arg0, %c0_i32 : i32, i32
  }
  func.func @transform_1(%arg0: i32, %arg1: i32) -> (i32, i32) {
    %c0_i32 = arith.constant 0 : i32
    %c0_i32_0 = arith.constant 0 : i32
    %c0_i32_1 = arith.constant 0 : i32
    return %c0_i32, %c0_i32_0 : i32, i32
  }
  func.func @transform_2(%arg0: i32, %arg1: i32) -> (i32, i32) {
    %c0_i32 = arith.constant 0 : i32
    %c0_i32_0 = arith.constant 0 : i32
    return %arg0, %c0_i32 : i32, i32
  }
  func.func @transform_3(%arg0: i32, %arg1: i32) -> (i32, i32) {
    %c0_i32 = arith.constant 0 : i32
    %c0_i32_0 = arith.constant 0 : i32
    %c0_i32_1 = arith.constant 0 : i32
    return %c0_i32, %c0_i32_0 : i32, i32
  }
  func.func @transform_4(%arg0: i32, %arg1: i32) -> (i32, i32) {
    %c0_i32 = arith.constant 0 : i32
    %c0_i32_0 = arith.constant 0 : i32
    %c0_i32_1 = arith.constant 0 : i32
    return %c0_i32, %c0_i32_0 : i32, i32
  }
  func.func @transform_5(%arg0: i32, %arg1: i32) -> (i32, i32) {
    %c0_i32 = arith.constant 0 : i32
    %0 = arith.addi %c0_i32, %arg1 : i32
    %c0_i32_0 = arith.constant 0 : i32
    %c0_i32_1 = arith.constant 0 : i32
    return %0, %c0_i32_0 : i32, i32
  }
  func.func @transform_6(%arg0: i32, %arg1: i32) -> (i32, i32) {
    %c0_i32 = arith.constant 0 : i32
    %c0_i32_0 = arith.constant 0 : i32
    return %c0_i32, %arg1 : i32, i32
  }
  func.func @transform_7(%arg0: i32, %arg1: i32) -> (i32, i32) {
    %c0_i32 = arith.constant 0 : i32
    %c0_i32_0 = arith.constant 0 : i32
    return %c0_i32, %arg1 : i32, i32
  }
  func.func @transform_8(%arg0: i32, %arg1: i32) -> (i32, i32) {
    %c0_i32 = arith.constant 0 : i32
    %c0_i32_0 = arith.constant 0 : i32
    return %arg0, %c0_i32 : i32, i32
  }
}

</mosaic_0001>

<bundles_post_ra>
// kernel: tpu_custom_call.1
= control target key start
LH: loop header
LB: loop body
LE: loop exit
PB: predicated region body
PF: predicated region fallthrough
CT: control target
= control target key end

     0   :  { %13 = vsyncpa [#allocation6], 0  ;;  %s395_s27 = smov [#allocation5]   ;;  %s505_s0 = inlined_call_operand.vmem [shape: bf16[8,128], index: 0, kind: input, shape index: {}]   ;;  %s506_s1 = inlined_call_operand.vmem [shape: bf16[8,128], index: 1, kind: input, shape index: {}]   ;;  %s507_s2 = inlined_call_operand.vmem [shape: s32[8,1], index: 2, kind: input, shape index: {}]   ;;  %s508_s3 = inlined_call_operand.vmem [shape: s32[1,8], index: 3, kind: input, shape index: {}]   ;;  %s509_s4 = inlined_call_operand.vmem [shape: s32[1,8], index: 4, kind: input, shape index: {}]   ;;  %s510_s5 = inlined_call_operand.hbm [shape: bf16[128,128], index: 5, kind: input, shape index: {}]   ;;  %s511_s6 = inlined_call_operand.vmem [shape: s32[1,128], index: 6, kind: input, shape index: {}]   ;;  %s512_s7 = inlined_call_operand.vmem [shape: s32[1,128], index: 7, kind: input, shape index: {}]   ;;  %s513_s8 = inlined_call_operand.vmem [shape: f32[8,1], index: 8, kind: output, shape index: {}]  }
   0x1   :  { %s29_s28 = sshll.u32 %s395_s27, 4  ;;  %s371_s9 = scalar_lea.hbm %s510_s5, 1024  ;;  %s30_s28 = int_to_ptr.vmem [resolvable:$true] %s29_s28 }
   0x2   :  { %p372_p0 = scmp.ne.s32.totalorder %s510_s5, %s371_s9  ;;  %p375_p1 = scmp.lt.u32.totalorder %s371_s9, %s510_s5 }
   0x4   :  { %p377_p2 = pnand %p375_p1, %p372_p0 }
   0x6   :  { %380 = shalt.err (!%p377_p2)
}
   0x7   :  { %s381_s14 = scalar_lea.vmem %s30_s28, 1024  ;;  %p386_p4 = scmp.lt.s32.totalorder %s30_s28, %s30_s28 }
   0x8   :  { %p382_p3 = scmp.ne.s32.totalorder %s30_s28, %s381_s14  ;;  %p387_p5 = scmp.lt.s32.totalorder %s381_s14, %s381_s14 }
   0xa   :  { %p388_p6 = por %p387_p5, %p386_p4 }
   0xc   :  { %p389_p7 = pnand %p388_p6, %p382_p3 }
   0xe   :  { %392 = shalt.err (!%p389_p7)
}
   0xf   :  { %s396_s15 = smov 64   ;;  %s397_s16 = smov 4  }
  0x10   :  { %35 = dma.hbm_to_vmem [thread:$0]  %s510_s5, 1024, %s30_s28, [#allocation6], %s396_s15, %s396_s15, %s397_s16  }
  0x11   :  { %393 = dma.done.wait [#allocation6], 1024  }
  0x12   :  { %394 = vsyncadd [#allocation6], 4294966272  ;;  %v398_v0 = vmov 0.0   ;;  %vm399_vm0 = vmmov 0   ;;  %v400_v1 = vmov 0   ;;  %v355_v2 = vld [vmem:[#allocation5] sm:$0xff]   ;;  %v105_v14 = vlaneseq }
  0x13   :  { %328 = vmatprep.subr.bf16.mxu1 %v398_v0  ;;  %322 = vmatprep.subr.bf16.mxu0 %v398_v0  ;;  %v49_v3 = vld [vmem:[%s506_s1] sm:$0xf]  ;;  %v357_v7 = vld [vmem:[#allocation5 + $0x10] sm:$0xff]   ;;  %v358_v8 = vld [vmem:[#allocation5 + $0x18] sm:$0xff]   ;;  %vm114_vm2 = vcmask 64512   ;;  %vm118_vm4 = vcmask 7168  }
  0x14   :  { %324 = vmatprep.mubr.msk.bf16.mxu0 %vm399_vm0, %v398_v0  ;;  %344 = vmatprep.mubr.msk.bf16.mxu1 %vm399_vm0, %v398_v0  ;;  %v356_v4 = vld [vmem:[#allocation5 + $0x8] sm:$0xff]   ;;  %v359_v9 = vld [vmem:[#allocation5 + $0x20] sm:$0xff]   ;;  %v361_v11 = vld [vmem:[#allocation5 + $0x30] sm:$0xff]   ;;  %v106_v18 = vshrl.u32 %v105_v14, 7 }
  0x15   :  { %354 = vset.pattern.permute.xlu0 %v400_v1  ;;  %329 = vmatpush3.bf16.xpose.msra.mxu1 %v355_v2  ;;  %v48_v5 = vld [vmem:[%s505_s0] sm:$0xf]  ;;  %v362_v12 = vld [vmem:[#allocation5 + $0x38] sm:$0xff]  }
  0x16   :  { %330 = vmatprep.subr.bf16.mxu1 %v398_v0  ;;  %323 = vmatpush3.bf16.xpose.msra.mxu0 %v49_v3  ;;  %v91_v6 = vld [vmem:[%s507_s2] sm:$0xff]  ;;  %v107_v26 = vsub.s32 0, %v106_v18 }
  0x17   :  { %97 = vperm.xlu0 %354, %v91_v6   ;;  %v360_v10 = vld [vmem:[#allocation5 + $0x28] sm:$0xff]  }
  0x18   :  { %v129_v13 = vld [vmem:[%s505_s0] sm:$0xf] }
  0x19   :  { %v102_v21 = vld [vmem:[%s509_s4] sm:$0x1] }
  0x1a   :  { %v297_v24 = vld [vmem:[%s508_s3] ss:$0 sm:$0xff]  ;;  %v103_v25 = vcvt.s32.f32 %v102_v21 }
  0x1b   :  { %241 = vperm.xlu0 %354, %v91_v6   ;;  %v246_v28 = vld [vmem:[%s512_s7] sm:$0x1] }
  0x1c   :  { %v108_v27 = vrot.slane %v103_v25, %v107_v26  ;;  %v308_v30 = vld [vmem:[%s511_s6] ss:$0 sm:$0xff]  ;;  %v247_v32 = vcvt.s32.f32 %v246_v28 }
  0x1d   :  { %331 = vmatpush3.bf16.xpose.msra.mxu1 %v356_v4  ;;  %325 = vmatmul.mubr.bf16.vlgmr.msra.gmra.mrb[0].mxu0 %v48_v5 }
  0x1e   :  { %332 = vmatprep.subr.bf16.mxu1 %v398_v0  ;;  %v252_v36 = vrot.slane %v247_v32, %v107_v26 }
  0x25   :  { %333 = vmatpush3.bf16.xpose.msra.mxu1 %v357_v7 }
  0x26   :  { %334 = vmatprep.subr.bf16.mxu1 %v398_v0 }
  0x2d   :  { %335 = vmatpush3.bf16.xpose.msra.mxu1 %v358_v8 }
  0x2e   :  { %336 = vmatprep.subr.bf16.mxu1 %v398_v0 }
  0x35   :  { %337 = vmatpush3.bf16.xpose.msra.mxu1 %v359_v9 }
  0x36   :  { %338 = vmatprep.subr.bf16.mxu1 %v398_v0 }
  0x3d   :  { %339 = vmatpush3.bf16.xpose.msra.mxu1 %v360_v10 }
  0x3e   :  { %340 = vmatprep.subr.bf16.mxu1 %v398_v0 }
  0x45   :  { %341 = vmatpush3.bf16.xpose.msra.mxu1 %v361_v11 }
  0x46   :  { %342 = vmatprep.subr.bf16.mxu1 %v398_v0 }
  0x4d   :  { %343 = vmatpush3.bf16.xpose.msra.mxu1 %v362_v12 }
  0x54   :  { %345 = vmatmul.mubr.bf16.vlgmr.msra.gmra.mrb[0].mxu1 %v129_v13 }
  0x96   :  { %v98_v23 = vpop.permute.xlu0 %97 }
  0x97   :  { %vm99_vm1 = vcmp.eq.s32.totalorder %v297_v24, %v98_v23 }
  0x98   :  { %v298_v29 = vsel %vm99_vm1, 1.0, %v398_v0 }
  0x99   :  { %v110_v33 = vmul.f32 %v298_v29, %v108_v27 }
  0x9a   :  { %v242_v31 = vpop.permute.xlu0 %241 }
  0x9b   :  { %vm243_vm3 = vcmp.eq.s32.totalorder %v308_v30, %v242_v31  ;;  %v125_v38 = vsel %vm114_vm2, %v110_v33, 0.0 }
  0x9c   :  { %v309_v37 = vsel %vm243_vm3, 1.0, %v398_v0 }
  0x9d   :  { %v254_v39 = vmul.f32 %v309_v37, %v252_v36 }
  0xf0   :  { %v84_v15 = vpop.f32.mrb[0].mxu0 }
  0xf1   :  { %v299_v16 = vadd.f32 -14.285714, %v84_v15  ;;  %v326_v17 = vpop.f32.mrb[1].mxu0  ;;  %v120_v40 = vmul.f32 %v110_v33, %v84_v15 }
  0xf2   :  { %v87_v19 = vpop.f32.mrb[2].mxu0 }
  0xf3   :  { %v112_v20 = vmul.f32 1.442695, %v299_v16  ;;  %v327_v22 = vpop.f32.mrb[3].mxu0  ;;  %v121_v41 = vsel %vm114_vm2, %v120_v40, 0.0 }
  0xf5   :  { %363 = vpow2.f32 %v112_v20 }
  0xff   :  { %v364_v34 = vpop.eup %363 }
 0x100   :  { %v115_v35 = vsel %vm114_vm2, %v364_v34, 0.0 }
 0x101   :  { %116 = vadd.xlane.f32.xlu1 %v115_v35 }
 0x105   :  { %126 = vadd.xlane.f32.xlu1 %v125_v38 }
 0x109   :  { %271 = vadd.xlane.f32.xlu1 %v254_v39 }
 0x10d   :  { %122 = vadd.xlane.f32.xlu1 %v121_v41 }
 0x127   :  { %v228_v42 = vpop.f32.mrb[0].mxu1 }
 0x128   :  { %v310_v43 = vadd.f32 -14.285714, %v228_v42  ;;  %v346_v44 = vpop.f32.mrb[1].mxu1  ;;  %v265_v45 = vmul.f32 %v254_v39, %v228_v42 }
 0x129   :  { %v231_v46 = vpop.f32.mrb[2].mxu1 }
 0x12a   :  { %v257_v47 = vmul.f32 1.442695, %v310_v43  ;;  %v347_v48 = vpop.f32.mrb[3].mxu1  ;;  %266 = vadd.xlane.f32.xlu1 %v265_v45 }
 0x12c   :  { %365 = vpow2.f32 %v257_v47 }
 0x136   :  { %v366_v49 = vpop.eup %365 }
 0x137   :  { %259 = vadd.xlane.f32.xlu0 %v366_v49 }
 0x18e   :  { %v117_v50 = vpop.xlane.xlu1 %116 }
 0x18f   :  { %119 = vst.msk [vmem:[#allocation2] sm:$0xff] %vm118_vm4, %v117_v50 }
 0x192   :  { %v127_v51 = vpop.xlane.xlu1 %126 }
 0x193   :  { %128 = vst.msk [vmem:[#allocation4] sm:$0xff] %vm118_vm4, %v127_v51 }
 0x196   :  { %v272_v52 = vpop.xlane.xlu1 %271  ;;  %v255_v59 = vld [vmem:[#allocation2] sm:$0xff] }
 0x19a   :  { %v270_v53 = vld [vmem:[#allocation4] sm:$0xff]  ;;  %v123_v54 = vpop.xlane.xlu1 %122 }
 0x19b   :  { %v273_v55 = vadd.f32 %v272_v52, %v270_v53  ;;  %124 = vst.msk [vmem:[#allocation3] sm:$0xff] %vm118_vm4, %v123_v54 }
 0x19d   :  { %274 = vst.msk [vmem:[#allocation4] sm:$0xff] %vm118_vm4, %v273_v55 }
 0x1a2   :  { %v264_v56 = vld [vmem:[#allocation3] sm:$0xff] }
 0x1a4   :  { %v282_v63 = vld [vmem:[#allocation4] sm:$0xff] }
 0x1a5   :  { %vm283_vm5 = vcmp.gt.f32.partialorder %v282_v63, 0.0 }
 0x1a6   :  { %v284_v0 = vsel %vm283_vm5, %v282_v63, 1.0 }
 0x1b7   :  { %v267_v57 = vpop.xlane.xlu1 %266 }
 0x1b8   :  { %v268_v58 = vadd.f32 %v267_v57, %v264_v56 }
 0x1ba   :  { %269 = vst.msk [vmem:[#allocation3] sm:$0xff] %vm118_vm4, %v268_v58 }
 0x1c1   :  { %v285_v5 = vld [vmem:[#allocation3] sm:$0xff] }
 0x1c4   :  { %v260_v60 = vpop.xlane.xlu0 %259 }
 0x1c5   :  { %v261_v61 = vadd.f32 %v260_v60, %v255_v59 }
 0x1c7   :  { %263 = vst.msk [vmem:[#allocation2] sm:$0xff] %vm118_vm4, %v261_v61 }
 0x1ce   :  { %v278_v62 = vld [vmem:[#allocation2] sm:$0xff] }
 0x1cf   :  { %367 = vlog2.f32 %v278_v62 }
 0x1d0   :  { %369 = vrcp.f32 %v284_v0 }
 0x1d9   :  { %v368_v1 = vpop.eup %367 }
 0x1da   :  { %v280_v2 = vmul.f32 0.6931472, %v368_v1  ;;  %v370_v8 = vpop.eup %369 }
 0x1dc   :  { %v281_v3 = vadd.f32 14.285714, %v280_v2 }
 0x1de   :  { %v286_v4 = vmul.f32 %v282_v63, %v281_v3 }
 0x1e0   :  { %v287_v6 = vsub.f32 %v285_v5, %v286_v4 }
 0x1e2   :  { %v288_v7 = vsub.f32 0.0, %v287_v6 }
 0x1e4   :  { %v290_v9 = vmul.f32 %v370_v8, %v288_v7 }
 0x1e6   :  { %291 = vst.msk [vmem:[%s513_s8] sm:$0xff] %vm118_vm4, %v290_v9 }
 0x1e7   :  { %296 = vsyncpa [#allocation6], 1 }

</bundles_post_ra>
